<compile_context>
chip_gen: v6e
topology: v6e:2x2x1
jax: 0.10.0
libtpu: 0.0.40
codegen_flags: <defaults>
</compile_context>

<pallas_src>
import functools
import math

import jax
import jax.numpy as jnp
from jax import lax
from jax.experimental import pallas as pl
from jax.experimental.pallas import tpu as pltpu

F32 = jnp.float32
BF16 = jnp.bfloat16

# Hyper-parameters that come from argparse in the original script.
K_HITS = 2          # args.k
ALPHA = 0.8         # args.alpha
BETA = 0.2          # args.beta
LAMBDA_ = 0.5       # lambda_
TRAIN_ITERS = 2     # train_iters (kept tiny for the demo)
PERTURBATIONS = 2   # perturbations
LR = 0.01

_VMEM_LIMIT = 48 * 1024 * 1024   # headroom under v7x (64 MiB), fine on v5e/v6e


def _cparams(sem):
    return pltpu.CompilerParams(dimension_semantics=sem,
                                vmem_limit_bytes=_VMEM_LIMIT)


def _round_up(x, m):
    return ((x + m - 1) // m) * m


def _pad2(x, rows, cols=None):
    r, c = x.shape
    pr = rows - r
    pc = (cols - c) if cols is not None else 0
    if pr == 0 and pc == 0:
        return x
    return jnp.pad(x, ((0, pr), (0, pc)))


def _row_block(n_rows, n_cols, *, bytes_per_el=4, target_bytes=4 << 20,
               cap=512, align=16):
    """Largest row tile that divides n_rows, is a multiple of `align` (16 keeps
    bf16 sublane tiling happy) and keeps one (rows, n_cols) block near
    target_bytes.  n_rows is always padded to a multiple of 128 by the driver,
    so the search terminates at >= align."""
    if n_rows <= align:
        return n_rows
    limit = max(align, min(cap, target_bytes // max(bytes_per_el * n_cols, 1)))
    t = (min(limit, n_rows) // align) * align
    while t >= align:
        if n_rows % t == 0:
            return t
        t -= align
    return n_rows


def _lane_block(n, cap=2048):
    """Largest multiple of 128 <= cap that divides n (n padded to 128)."""
    if n <= 128:
        return n
    t = (min(cap, n) // 128) * 128
    while t >= 128:
        if n % t == 0:
            return t
        t -= 128
    return n


def _mxu_tiles(npad, k_cap=2048, m_cap=256):
    tk = _lane_block(npad, cap=k_cap)
    tm = _row_block(npad, tk, bytes_per_el=2, target_bytes=1 << 20, cap=m_cap)
    return tm, tk


# ----------------------------------------------------------------------------
# Pallas kernels
# ----------------------------------------------------------------------------
def _modified_deg_kernel(ch_ref, ori_ref, mod_ref, deg_ref):
    """Row block of modified_adj + its partial column-degree row.
    adj_changes is kept symmetric by the driver (both (r,c) and (c,r) are
    updated, exactly as in the original), so clamp(sq + sq.T) == clamp(2*sq)
    and no transposed input stream is needed."""
    i = pl.program_id(0)
    tb, npad = ch_ref.shape
    row = lax.broadcasted_iota(jnp.int32, (tb, npad), 0) + i * tb
    col = lax.broadcasted_iota(jnp.int32, (tb, npad), 1)
    offdiag = (row != col).astype(F32)
    sq = ch_ref[...] * offdiag
    mod = jnp.clip(2.0 * sq, -1.0, 1.0) + ori_ref[...]
    mod_ref[...] = mod
    deg_ref[...] = jnp.sum(mod, axis=0, keepdims=True)


def _degree_kernel(a_ref, deg_ref):
    deg_ref[...] = jnp.sum(a_ref[...], axis=0, keepdims=True)


def _normalize_apply_kernel(a_ref, rcol_ref, rrow_ref, out_ref):
    """out = D^-1/2 (A + I) D^-1/2 as bf16; identity built on the fly."""
    i = pl.program_id(0)
    tb, npad = a_ref.shape
    row = lax.broadcasted_iota(jnp.int32, (tb, npad), 0) + i * tb
    col = lax.broadcasted_iota(jnp.int32, (tb, npad), 1)
    eye = (row == col).astype(F32)
    out_ref[...] = (rcol_ref[...] * (a_ref[...] + eye)
                    * rrow_ref[...]).astype(out_ref.dtype)


def _hits_auth_kernel(adj_ref, inter_ref, hub_ref, auth_ref, newinter_ref,
                      acc_ref):
    """K-blocked: auth = clamp(adj @ inter); inter' = clamp(a*auth + b*hub)."""
    k = pl.program_id(1)

    @pl.when(k == 0)
    def _():
        acc_ref[...] = jnp.zeros_like(acc_ref)

    acc_ref[...] += jnp.dot(adj_ref[...], inter_ref[...].astype(BF16),
                            preferred_element_type=jnp.float32)

    @pl.when(k == pl.num_programs(1) - 1)
    def _():
        auth = jnp.clip(acc_ref[...], 0.0, 1.0)
        auth_ref[...] = auth
        newinter_ref[...] = jnp.clip(ALPHA * auth + BETA * hub_ref[...],
                                     0.0, 1.0)


def _hits_hub_kernel(adj_ref, inter_ref, hub_ref, acc_ref):
    """adj_norm is symmetric, so hub = adj.T @ inter == adj @ inter: same
    row-blocked MXU pass as the authority step (no transposed column block)."""
    k = pl.program_id(1)

    @pl.when(k == 0)
    def _():
        acc_ref[...] = jnp.zeros_like(acc_ref)

    acc_ref[...] += jnp.dot(adj_ref[...], inter_ref[...].astype(BF16),
                            preferred_element_type=jnp.float32)

    @pl.when(k == pl.num_programs(1) - 1)
    def _():
        hub_ref[...] = jnp.clip(acc_ref[...], 0.0, 1.0)


def _dense_kernel(x_ref, w_ref, out_ref):
    out_ref[...] = jnp.dot(x_ref[...].astype(BF16), w_ref[...].astype(BF16),
                           preferred_element_type=jnp.float32)


def _spmm_bias_kernel(adj_ref, xw_ref, b_ref, out_ref, acc_ref, *,
                      apply_log_softmax, tk):
    """out = adj @ xw + b, K-blocked with f32 accumulator.  xw (lane-narrow)
    stays fully resident in VMEM; the (tk, h) slice for the current K step is
    taken in-kernel.  Optional fused row-wise log_softmax on the last step."""
    k = pl.program_id(1)

    @pl.when(k == 0)
    def _():
        acc_ref[...] = jnp.zeros_like(acc_ref)

    off = pl.multiple_of(k * tk, 128)
    xw_blk = xw_ref[pl.ds(off, tk), :].astype(BF16)
    acc_ref[...] += jnp.dot(adj_ref[...], xw_blk,
                            preferred_element_type=jnp.float32)

    @pl.when(k == pl.num_programs(1) - 1)
    def _():
        z = acc_ref[...] + b_ref[...]
        if apply_log_softmax:
            m = jnp.max(z, axis=1, keepdims=True)
            z = z - (m + jnp.log(jnp.sum(jnp.exp(z - m), axis=1,
                                         keepdims=True)))
        out_ref[...] = z


def _masked_nll_kernel(logp_ref, onehot_ref, mask_ref, num_ref, den_ref):
    nll = -jnp.sum(onehot_ref[...] * logp_ref[...], axis=1, keepdims=True)
    m = mask_ref[...]
    num_ref[...] = jnp.sum(nll * m, axis=0, keepdims=True)
    den_ref[...] = jnp.sum(m, axis=0, keepdims=True)


def _meta_min_kernel(g_ref, a_ref, min_ref, *, n_true):
    i = pl.program_id(0)
    tb, npad = g_ref.shape
    row = lax.broadcasted_iota(jnp.int32, (tb, npad), 0) + i * tb
    col = lax.broadcasted_iota(jnp.int32, (tb, npad), 1)
    valid = (row < n_true) & (col < n_true)
    meta = g_ref[...] * (-2.0 * a_ref[...] + 1.0)
    meta = jnp.where(valid, meta, jnp.inf)
    min_ref[...] = jnp.min(jnp.min(meta, axis=1, keepdims=True),
                           axis=0, keepdims=True)


def _meta_argmax_kernel(g_ref, a_ref, d1c_ref, d1r_ref, gmin_ref,
                        best_ref, idx_ref, *, n_true):
    """Masked meta-gradient argmax, per-block partials (no NxN writeback)."""
    i = pl.program_id(0)
    tb, npad = g_ref.shape
    a = a_ref[...]
    meta = g_ref[...] * (-2.0 * a + 1.0) - gmin_ref[...]
    # filter_potential_singletons: modified_adj is symmetric, so
    # l_and + l_and.T == (deg1[j] + deg1[i]) * a[i, j]   (no transpose needed)
    mask = 1.0 - (d1r_ref[...] * a + d1c_ref[...] * a)
    score = meta * mask

    row = lax.broadcasted_iota(jnp.int32, (tb, npad), 0) + i * tb
    col = lax.broadcasted_iota(jnp.int32, (tb, npad), 1)
    valid = (row < n_true) & (col < n_true)
    score = jnp.where(valid, score, -jnp.inf)

    flat = row * npad + col
    bmax = jnp.max(jnp.max(score, axis=1, keepdims=True),
                   axis=0, keepdims=True)
    hit = score == bmax
    bidx = jnp.min(jnp.min(jnp.where(hit, flat, jnp.int32(npad * npad)),
                           axis=1, keepdims=True), axis=0, keepdims=True)
    best_ref[...] = bmax
    idx_ref[...] = bidx


# ----------------------------------------------------------------------------
# pallas_call wrappers
# ----------------------------------------------------------------------------
def modified_adj_and_norm(adj_changes, ori_adj):
    npad = ori_adj.shape[0]
    tb = _row_block(npad, npad, target_bytes=2 << 20, cap=512)
    nb = npad // tb
    mod, deg_part = pl.pallas_call(
        _modified_deg_kernel,
        grid=(nb,),
        in_specs=[pl.BlockSpec((tb, npad), lambda i: (i, 0)),
                  pl.BlockSpec((tb, npad), lambda i: (i, 0))],
        out_specs=(pl.BlockSpec((tb, npad), lambda i: (i, 0)),
                   pl.BlockSpec((None, 1, npad), lambda i: (i, 0, 0))),
        out_shape=(jax.ShapeDtypeStruct((npad, npad), F32),
                   jax.ShapeDtypeStruct((nb, 1, npad), F32)),
        compiler_params=_cparams(("parallel",)),
    )(adj_changes, ori_adj)
    deg = jnp.sum(deg_part, axis=0)           # (1, npad) == modified_adj.sum(0)
    adj_norm = _apply_normalization(mod, deg)
    return mod, deg, adj_norm


def column_degree(a):
    npad = a.shape[0]
    tb = _row_block(npad, npad, target_bytes=8 << 20, cap=1024)
    nb = npad // tb
    deg_part = pl.pallas_call(
        _degree_kernel,
        grid=(nb,),
        in_specs=[pl.BlockSpec((tb, npad), lambda i: (i, 0))],
        out_specs=pl.BlockSpec((None, 1, npad), lambda i: (i, 0, 0)),
        out_shape=jax.ShapeDtypeStruct((nb, 1, npad), F32),
        compiler_params=_cparams(("parallel",)),
    )(a)
    return jnp.sum(deg_part, axis=0)


def _apply_normalization(a, deg):
    # A is symmetric with zero diagonal here, so rowsum(A + I) = colsum(A) + 1.
    npad = a.shape[0]
    r_row = lax.rsqrt(deg + 1.0)                           # (1, Npad)
    r_row = jnp.where(jnp.isinf(r_row), 0.0, r_row)
    r_col = r_row.reshape(npad, 1)
    tb = _row_block(npad, npad, target_bytes=8 << 20, cap=1024)
    return pl.pallas_call(
        _normalize_apply_kernel,
        grid=(npad // tb,),
        in_specs=[pl.BlockSpec((tb, npad), lambda i: (i, 0)),
                  pl.BlockSpec((tb, 1), lambda i: (i, 0)),
                  pl.BlockSpec((1, npad), lambda i: (0, 0))],
        out_specs=pl.BlockSpec((tb, npad), lambda i: (i, 0)),
        out_shape=jax.ShapeDtypeStruct((npad, npad), BF16),   # bf16 adjacency
        compiler_params=_cparams(("parallel",)),
    )(a, r_col, r_row)


def normalize_adj(a):
    return _apply_normalization(a, column_degree(a))


def hits_propagate(adj_norm, x):
    npad, f = x.shape
    tm, tk = _mxu_tiles(npad, k_cap=1024)
    grid = (npad // tm, npad // tk)
    # TODO(synk): for very wide feature matrices keep `inter` resident / bf16
    # instead of re-streaming its (tk, f) blocks for every row block.
    auth, inter, hub = x, x, x
    for _ in range(K_HITS):      # static unroll, k is a compile-time constant
        auth, inter = pl.pallas_call(
            _hits_auth_kernel,
            grid=grid,
            in_specs=[pl.BlockSpec((tm, tk), lambda i, k: (i, k)),
                      pl.BlockSpec((tk, f), lambda i, k: (k, 0)),
                      pl.BlockSpec((tm, f), lambda i, k: (i, 0))],
            out_specs=(pl.BlockSpec((tm, f), lambda i, k: (i, 0)),
                       pl.BlockSpec((tm, f), lambda i, k: (i, 0))),
            out_shape=(jax.ShapeDtypeStruct((npad, f), F32),
                       jax.ShapeDtypeStruct((npad, f), F32)),
            scratch_shapes=[pltpu.VMEM((tm, f), jnp.float32)],
            compiler_params=_cparams(("parallel", "arbitrary")),
        )(adj_norm, inter, hub)
        hub = pl.pallas_call(
            _hits_hub_kernel,
            grid=grid,
            in_specs=[pl.BlockSpec((tm, tk), lambda i, k: (i, k)),
                      pl.BlockSpec((tk, f), lambda i, k: (k, 0))],
            out_specs=pl.BlockSpec((tm, f), lambda i, k: (i, 0)),
            out_shape=jax.ShapeDtypeStruct((npad, f), F32),
            scratch_shapes=[pltpu.VMEM((tm, f), jnp.float32)],
            compiler_params=_cparams(("parallel", "arbitrary")),
        )(adj_norm, inter)
    return ALPHA * auth + BETA * hub


def dense_matmul(x, w):
    npad, fin = x.shape
    fout = w.shape[1]
    tb = _row_block(npad, max(fin, fout), target_bytes=2 << 20, cap=512)
    return pl.pallas_call(
        _dense_kernel,
        grid=(npad // tb,),
        in_specs=[pl.BlockSpec((tb, fin), lambda i: (i, 0)),
                  pl.BlockSpec((fin, fout), lambda i: (0, 0))],
        out_specs=pl.BlockSpec((tb, fout), lambda i: (i, 0)),
        out_shape=jax.ShapeDtypeStruct((npad, fout), F32),
        compiler_params=_cparams(("parallel",)),
    )(x, w)


def spmm_bias(adj_norm, xw, b, apply_log_softmax=False):
    npad = adj_norm.shape[0]
    h = xw.shape[1]
    tm, tk = _mxu_tiles(npad, k_cap=2048)
    kernel = functools.partial(_spmm_bias_kernel,
                               apply_log_softmax=apply_log_softmax, tk=tk)
    return pl.pallas_call(
        kernel,
        grid=(npad // tm, npad // tk),
        in_specs=[pl.BlockSpec((tm, tk), lambda i, k: (i, k)),
                  pl.BlockSpec((npad, h), lambda i, k: (0, 0)),  # resident xw
                  pl.BlockSpec((1, h), lambda i, k: (0, 0))],
        out_specs=pl.BlockSpec((tm, h), lambda i, k: (i, 0)),
        out_shape=jax.ShapeDtypeStruct((npad, h), F32),
        scratch_shapes=[pltpu.VMEM((tm, h), jnp.float32)],
        compiler_params=_cparams(("parallel", "arbitrary")),
    )(adj_norm, xw, jnp.reshape(b, (1, -1)))


def gcn_forward(adj_norm, x, weights, biases, log_softmax_out=True):
    # TODO(synk): nhid/nclass are lane-narrow (16/4); pad the weight columns to
    # 128 for lane-dense stores if the epilogue ever shows up in profiles.
    hidden = x
    nlayers = len(weights)
    for li, (w, b) in enumerate(zip(weights, biases)):
        xw = dense_matmul(hidden, w)
        hidden = spmm_bias(adj_norm, xw, b,
                           apply_log_softmax=(log_softmax_out
                                              and li == nlayers - 1))
    return hidden


def masked_nll(logp, onehot, mask):
    npad, c = logp.shape
    tb = _row_block(npad, c, target_bytes=8 << 20, cap=1024)
    nb = npad // tb
    num_part, den_part = pl.pallas_call(
        _masked_nll_kernel,
        grid=(nb,),
        in_specs=[pl.BlockSpec((tb, c), lambda i: (i, 0)),
                  pl.BlockSpec((tb, c), lambda i: (i, 0)),
                  pl.BlockSpec((tb, 1), lambda i: (i, 0))],
        out_specs=(pl.BlockSpec((None, 1, 1), lambda i: (i, 0, 0)),
                   pl.BlockSpec((None, 1, 1), lambda i: (i, 0, 0))),
        out_shape=(jax.ShapeDtypeStruct((nb, 1, 1), F32),
                   jax.ShapeDtypeStruct((nb, 1, 1), F32)),
        compiler_params=_cparams(("parallel",)),
    )(logp, onehot, mask)
    return jnp.sum(num_part) / jnp.maximum(jnp.sum(den_part), 1.0)


def meta_grad_argmax(grad_sum, modified_adj, deg, n_true):
    """Flat argmax of grad_sum*(-2A+1) - min, masked by the singleton filter,
    restricted to the real (unpadded) NxN region."""
    npad = grad_sum.shape[0]
    tb = _row_block(npad, npad, target_bytes=2 << 20, cap=512)
    nb = npad // tb
    grid = (nb,)
    gmin_part = pl.pallas_call(
        functools.partial(_meta_min_kernel, n_true=n_true),
        grid=grid,
        in_specs=[pl.BlockSpec((tb, npad), lambda i: (i, 0)),
                  pl.BlockSpec((tb, npad), lambda i: (i, 0))],
        out_specs=pl.BlockSpec((None, 1, 1), lambda i: (i, 0, 0)),
        out_shape=jax.ShapeDtypeStruct((nb, 1, 1), F32),
        compiler_params=_cparams(("parallel",)),
    )(grad_sum, modified_adj)
    gmin = jnp.min(gmin_part).reshape(1, 1)

    d1_row = (deg == 1.0).astype(F32)          # (1, Npad)
    d1_col = d1_row.reshape(npad, 1)
    best_part, idx_part = pl.pallas_call(
        functools.partial(_meta_argmax_kernel, n_true=n_true),
        grid=grid,
        in_specs=[pl.BlockSpec((tb, npad), lambda i: (i, 0)),
                  pl.BlockSpec((tb, npad), lambda i: (i, 0)),
                  pl.BlockSpec((tb, 1), lambda i: (i, 0)),
                  pl.BlockSpec((1, npad), lambda i: (0, 0)),
                  pl.BlockSpec((1, 1), lambda i: (0, 0))],
        out_specs=(pl.BlockSpec((None, 1, 1), lambda i: (i, 0, 0)),
                   pl.BlockSpec((None, 1, 1), lambda i: (i, 0, 0))),
        out_shape=(jax.ShapeDtypeStruct((nb, 1, 1), F32),
                   jax.ShapeDtypeStruct((nb, 1, 1), jnp.int32)),
        compiler_params=_cparams(("parallel",)),
    )(grad_sum, modified_adj, d1_col, d1_row, gmin)
    blk = jnp.argmax(best_part.reshape(nb))
    return idx_part.reshape(nb)[blk]


# ----------------------------------------------------------------------------
# Pure-JAX mirror used only for autodiff (gradients wrt adj_changes / weights).
# TODO(synk): the Pallas kernels above have no custom VJP; gradients use this.
# ----------------------------------------------------------------------------
def _normalize_adj_ref(mod):
    n = mod.shape[0]
    mx = mod + jnp.eye(n, dtype=mod.dtype)
    r_inv = 1.0 / jnp.sqrt(jnp.sum(mx, axis=1))
    r_inv = jnp.where(jnp.isinf(r_inv), 0.0, r_inv)
    return r_inv[:, None] * mx * r_inv[None, :]


def _modified_adj_ref(adj_changes, ori_adj):
    sq = adj_changes - jnp.diag(jnp.diag(adj_changes))
    symm = jnp.clip(sq + sq.T, -1.0, 1.0)
    return symm + ori_adj


def _gcn_forward_ref(adj_norm, features, weights):
    hidden = features
    for w in weights:                       # with_bias=False, with_relu=False
        hidden = adj_norm @ hidden @ w
    return hidden


def _masked_nll_ref(logits, onehot, mask):
    logp = jax.nn.log_softmax(logits, axis=1)
    nll = -jnp.sum(onehot * logp, axis=1, keepdims=True)
    return jnp.sum(nll * mask) / jnp.maximum(jnp.sum(mask), 1.0)


def _loss_labeled_wrt_weights(weights, adj_norm, features, onehot_lab,
                              mask_train):
    logits = _gcn_forward_ref(adj_norm, features, weights)
    return _masked_nll_ref(logits, onehot_lab, mask_train)


def _attack_loss_wrt_changes(adj_changes, ori_adj, features, weights,
                             onehot_lab, mask_train, onehot_self, mask_unlab):
    mod = _modified_adj_ref(adj_changes, ori_adj)
    adj_norm = _normalize_adj_ref(mod)
    logits = _gcn_forward_ref(adj_norm, features, weights)
    l_lab = _masked_nll_ref(logits, onehot_lab, mask_train)
    l_unlab = _masked_nll_ref(logits, onehot_self, mask_unlab)
    return LAMBDA_ * l_lab + (1.0 - LAMBDA_) * l_unlab


_attack_grad = jax.jit(jax.grad(_attack_loss_wrt_changes))
_weights_grad = jax.jit(jax.grad(_loss_labeled_wrt_weights))


def _adam_step(params, grads, m, v, t, lr=LR, b1=0.9, b2=0.999, eps=1e-8):
    new_p, new_m, new_v = [], [], []
    for p, g, mi, vi in zip(params, grads, m, v):
        mi = b1 * mi + (1.0 - b1) * g
        vi = b2 * vi + (1.0 - b2) * g * g
        mhat = mi / (1.0 - b1 ** t)
        vhat = vi / (1.0 - b2 ** t)
        new_p.append(p - lr * mhat / (jnp.sqrt(vhat) + eps))
        new_m.append(mi)
        new_v.append(vi)
    return new_p, new_m, new_v


# ----------------------------------------------------------------------------
# MetaApprox forward driver
# ----------------------------------------------------------------------------
class MetaApproxPallas:
    def __init__(self, nfeat, hidden_sizes, nclass, nnodes, key):
        self.nfeat = nfeat
        self.hidden_sizes = hidden_sizes
        self.nclass = nclass
        self.nnodes = nnodes

        def uinit(k, shape, fan_out):
            stdv = 1.0 / math.sqrt(fan_out)
            return jax.random.uniform(k, shape, F32, -stdv, stdv)

        keys = jax.random.split(key, 8)
        nhid = hidden_sizes[0]
        # surrogate GANN Encoder params (with bias)
        self.sur_w1 = uinit(keys[0], (nfeat, nhid), nhid)
        self.sur_b1 = uinit(keys[1], (nhid,), nhid)
        self.sur_w2 = uinit(keys[2], (nhid, nclass), nclass)
        self.sur_b2 = uinit(keys[3], (nclass,), nclass)
        # inner attack GCN weights (bias unused: with_bias=False)
        self.w_init = [uinit(keys[4], (nfeat, nhid), nhid),
                       uinit(keys[5], (nhid, nclass), nclass)]
        self.zero_biases = [jnp.zeros((nhid,), F32), jnp.zeros((nclass,), F32)]
        self.last_unlabeled_loss = None

    # ---- train_surrogate: forward-only self-training labels -----------------
    # TODO(synk): the 200-iteration Adam training of the surrogate GANN is not
    # reproduced; the deterministically initialized weights are used directly.
    def _surrogate_self_training_labels(self, features, ori_adj, labels,
                                        idx_train):
        adj_norm = normalize_adj(ori_adj)                      # bf16
        x = hits_propagate(adj_norm, features)                 # GANN HITS loop
        logp = gcn_forward(adj_norm, x,
                           [self.sur_w1, self.sur_w2],
                           [self.sur_b1, self.sur_b2],
                           log_softmax_out=True)
        lst = jnp.argmax(logp, axis=1)
        lst = lst.at[idx_train].set(labels[idx_train])
        return lst

    def forward(self, features, ori_adj, labels, idx_train, idx_unlabeled,
                perturbations, ll_constraint=False, ll_cutoff=0.004):
        n = self.nnodes
        npad = _round_up(max(n, 8), 128)       # lane/sublane-friendly padding
        feat_p = _pad2(features, npad)
        adj_p = _pad2(ori_adj, npad, npad)
        onehot_lab = _pad2(jax.nn.one_hot(labels, self.nclass, dtype=F32), npad)
        mask_train = jnp.zeros((npad, 1), F32).at[idx_train, 0].set(1.0)
        mask_unlab = jnp.zeros((npad, 1), F32).at[idx_unlabeled, 0].set(1.0)

        labels_self_training = self._surrogate_self_training_labels(
            feat_p, adj_p, labels, idx_train)
        onehot_self = jax.nn.one_hot(labels_self_training, self.nclass,
                                     dtype=F32)

        adj_changes = jnp.zeros((npad, npad), F32)

        # TODO(synk): modified_adj/adj_norm could be updated incrementally per
        # perturbation (only 2 entries change); full rebuild kept for clarity.
        for _ in range(perturbations):
            # fused: symmetrize+clamp adj_changes, add ori_adj, column degrees,
            # and D^-1/2 (A+I) D^-1/2 (bf16)   (Pallas)
            modified_adj, deg, adj_norm = modified_adj_and_norm(adj_changes,
                                                                adj_p)

            # self._initialize(): deterministic re-init of weights + fresh Adam
            weights = list(self.w_init)
            m_state = [jnp.zeros_like(w) for w in weights]
            v_state = [jnp.zeros_like(w) for w in weights]
            grad_sum = jnp.zeros((npad, npad), F32)
            weights_for_output = weights

            for t in range(1, TRAIN_ITERS + 1):
                weights_for_output = weights   # weights of the last forward
                # meta-gradient wrt adj_changes (pure-JAX mirror)
                g_adj = _attack_grad(adj_changes, adj_p, feat_p, weights,
                                     onehot_lab, mask_train,
                                     onehot_self, mask_unlab)
                grad_sum = grad_sum + g_adj
                # Adam step on loss_labeled wrt weights
                g_w = _weights_grad(weights, adj_norm, feat_p,
                                    onehot_lab, mask_train)
                weights, m_state, v_state = _adam_step(
                    weights, g_w, m_state, v_state, t)

            # `output` of the final inner iteration, evaluated once with the
            # fused Pallas GCN forward (with_bias=False, log_softmax fused).
            output = gcn_forward(adj_norm, feat_p, weights_for_output,
                                 self.zero_biases, log_softmax_out=True)
            # GANN loss on unlabeled data with the TRUE labels (matches the
            # original loss_test_val print); stashed instead of printed.
            self.last_unlabeled_loss = masked_nll(output, onehot_lab,
                                                  mask_unlab)

            # meta-gradient scoring + flat argmax (Pallas, partials only)
            flat_idx = meta_grad_argmax(grad_sum, modified_adj, deg, n)
            # TODO(synk): log-likelihood (power-law) constraint filter not
            # implemented (demo calls with ll_constraint=False).
            row_idx = flat_idx // npad
            col_idx = flat_idx % npad
            val = -2.0 * modified_adj[row_idx, col_idx] + 1.0
            adj_changes = adj_changes.at[row_idx, col_idx].add(val)
            adj_changes = adj_changes.at[col_idx, row_idx].add(val)

        return (adj_changes + adj_p)[:n, :n]


# ----------------------------------------------------------------------------
if __name__ == "__main__":
    key = jax.random.PRNGKey(0)
    N, NFEAT, NHID, NCLASS = 16, 8, 16, 4
    k_adj, k_feat, k_lab, k_param = jax.random.split(key, 4)

    upper = jnp.triu((jax.random.uniform(k_adj, (N, N)) < 0.3).astype(F32), k=1)
    ori_adj = upper + upper.T                  # symmetric, zero-diag adjacency
    features = jax.random.uniform(k_feat, (N, NFEAT), F32)
    labels = jax.random.randint(k_lab, (N,), 0, NCLASS)
    idx_train = jnp.arange(0, 6)
    idx_unlabeled = jnp.arange(6, N)

    model = MetaApproxPallas(NFEAT, [NHID], NCLASS, N, k_param)
    out = model.forward(features, ori_adj, labels, idx_train, idx_unlabeled,
                        perturbations=PERTURBATIONS, ll_constraint=False)
    jax.block_until_ready(out)
    assert out.shape == (N, N) and out.dtype == jnp.float32
    print("KERNEL_OK")
</pallas_src>

<mosaic_0001>
module attributes {stable_mosaic.version = 11 : i64} {
  func.func @_degree_kernel(%arg0: i32, %arg1: memref<128x128xf32, #tpu.memory_space<vmem>>, %arg2: memref<1x1x128xf32, #tpu.memory_space<vmem>>) attributes {dimension_semantics = [#tpu.dimension_semantics<parallel>], iteration_bounds = array<i64: 1>, scalar_prefetch = 0 : i64, scratch_operands = 0 : i64, tpu.core_type = #tpu.core_type<tc>, window_params = [{transform_indices = @transform_0, window_bounds = array<i64: 128, 128>}, {transform_indices = @transform_1, window_bounds = array<i64: 1, 1, 128>}]} {
    %c0 = arith.constant 0 : index
    %c0_0 = arith.constant 0 : index
    %0 = vector.load %arg1[%c0, %c0_0] : memref<128x128xf32, #tpu.memory_space<vmem>>, vector<128x128xf32>
    %cst = arith.constant dense<0.000000e+00> : vector<128xf32>
    %1 = vector.multi_reduction <add>, %0, %cst [0] : vector<128x128xf32> to vector<128xf32>
    %2 = vector.shape_cast %1 : vector<128xf32> to vector<1x128xf32>
    %c0_1 = arith.constant 0 : index
    %c0_2 = arith.constant 0 : index
    %c0_3 = arith.constant 0 : index
    %3 = vector.load %arg2[%c0_1, %c0_2, %c0_3] : memref<1x1x128xf32, #tpu.memory_space<vmem>>, vector<1x1x128xf32>
    %4 = vector.shape_cast %3 : vector<1x1x128xf32> to vector<1x128xf32>
    %5 = vector.shape_cast %2 : vector<1x128xf32> to vector<1x1x128xf32>
    tpu.vector_store %arg2[%c0_1, %c0_2, %c0_3], %5 {strides = array<i32>} : memref<1x1x128xf32, #tpu.memory_space<vmem>>, vector<1x1x128xf32>,
    return
  }
  func.func @transform_0(%arg0: i32) -> (i32, i32) {
    %c0_i32 = arith.constant 0 : i32
    %c0_i32_0 = arith.constant 0 : i32
    return %arg0, %c0_i32 : i32, i32
  }
  func.func @transform_1(%arg0: i32) -> (i32, i32, i32) {
    %c0_i32 = arith.constant 0 : i32
    %c0_i32_0 = arith.constant 0 : i32
    %c0_i32_1 = arith.constant 0 : i32
    return %arg0, %c0_i32, %c0_i32_0 : i32, i32, i32
  }
}

</mosaic_0001>

<bundles_post_ra>
// kernel: tpu_custom_call.1
= control target key start
LH: loop header
LB: loop body
LE: loop exit
PB: predicated region body
PF: predicated region fallthrough
CT: control target
= control target key end

     0   :  { %6 = vsyncpa [#allocation3], 0  ;;  %s144_s0 = inlined_call_operand.hbm [shape: f32[128,128], index: 0, kind: input, shape index: {}]   ;;  %s145_s1 = inlined_call_operand.hbm [shape: f32[1,1,128], index: 1, kind: output, shape index: {}]  }
   0x1   :  { %7 = vsyncpa [#allocation4], 0  ;;  %s124_s6 = smov [#allocation2]  }
   0x2   :  { %s13_s7 = sshll.u32 %s124_s6, 4  ;;  %s14_s7 = int_to_ptr.vmem [resolvable:$true] %s13_s7 }
   0x3   :  { %s88_s8 = scalar_lea.vmem %s14_s7, 2048  ;;  %p93_p1 = scmp.lt.s32.totalorder %s14_s7, %s14_s7 }
   0x4   :  { %p89_p0 = scmp.ne.s32.totalorder %s14_s7, %s88_s8  ;;  %p94_p2 = scmp.lt.s32.totalorder %s88_s8, %s88_s8 }
   0x6   :  { %p95_p3 = por %p94_p2, %p93_p1 }
   0x8   :  { %p96_p4 = pnand %p95_p3, %p89_p0 }
   0xa   :  { %99 = shalt.err (!%p96_p4)
}
   0xb   :  { %s125_s9 = smov 128   ;;  %s126_s10 = smov 8  }
   0xc   :  { %19 = dma.hbm_to_vmem [thread:$0]  %s144_s0, 2048, %s14_s7, [#allocation3], %s125_s9, %s125_s9, %s126_s10  }
   0xd   :  { %120 = dma.done.wait [#allocation3], 2048  }
   0xe   :  { %121 = vsyncadd [#allocation3], 4294965248  ;;  %v23_v0 = vld [vmem:[#allocation2] sm:$0xff]  ;;  %v24_v1 = vld [vmem:[#allocation2 + $0x8] sm:$0xff]  ;;  %s127_s0 = smov [#allocation5]  }
   0xf   :  { %v25_v2 = vld [vmem:[#allocation2 + $0x10] sm:$0xff]  ;;  %v39_v3 = vadd.f32 %v24_v1, %v23_v0  ;;  %v26_v4 = vld [vmem:[#allocation2 + $0x18] sm:$0xff]  ;;  %v27_v6 = vld [vmem:[#allocation2 + $0x20] sm:$0xff]  ;;  %s67_s13 = sshll.u32 %s127_s0, 4  ;;  %s68_s13 = int_to_ptr.vmem [resolvable:$true] %s67_s13 }
  0x10   :  { %v28_v8 = vld [vmem:[#allocation2 + $0x28] sm:$0xff]  ;;  %v29_v10 = vld [vmem:[#allocation2 + $0x30] sm:$0xff]  ;;  %v30_v12 = vld [vmem:[#allocation2 + $0x38] sm:$0xff]  ;;  %s100_s14 = scalar_lea.vmem %s68_s13, 16  ;;  %s104_s15 = scalar_lea.vmem %s68_s13, 32 }
  0x11   :  { %v40_v5 = vadd.f32 %v39_v3, %v25_v2  ;;  %v31_v14 = vld [vmem:[#allocation2 + $0x40] sm:$0xff]  ;;  %v32_v16 = vld [vmem:[#allocation2 + $0x48] sm:$0xff]  ;;  %v33_v18 = vld [vmem:[#allocation2 + $0x50] sm:$0xff]  ;;  %p101_p5 = scmp.ne.s32.totalorder %s68_s13, %s100_s14  ;;  %p105_p6 = scmp.lt.s32.totalorder %s68_s13, %s68_s13 }
  0x12   :  { %v34_v20 = vld [vmem:[#allocation2 + $0x58] sm:$0xff]  ;;  %v35_v22 = vld [vmem:[#allocation2 + $0x60] sm:$0xff]  ;;  %v36_v24 = vld [vmem:[#allocation2 + $0x68] sm:$0xff]  ;;  %p106_p7 = scmp.lt.s32.totalorder %s104_s15, %s100_s14 }
  0x13   :  { %v41_v7 = vadd.f32 %v40_v5, %v26_v4  ;;  %v37_v26 = vld [vmem:[#allocation2 + $0x70] sm:$0xff]  ;;  %v38_v28 = vld [vmem:[#allocation2 + $0x78] sm:$0xff] }
  0x14   :  { %p107_p8 = por %p106_p7, %p105_p6 }
  0x15   :  { %v42_v9 = vadd.f32 %v41_v7, %v27_v6 }
  0x16   :  { %p108_p9 = pnand %p107_p8, %p101_p5 }
  0x17   :  { %v43_v11 = vadd.f32 %v42_v9, %v28_v8 }
  0x19   :  { %v44_v13 = vadd.f32 %v43_v11, %v29_v10 }
  0x1b   :  { %v45_v15 = vadd.f32 %v44_v13, %v30_v12 }
  0x1d   :  { %v46_v17 = vadd.f32 %v45_v15, %v31_v14 }
  0x1f   :  { %v47_v19 = vadd.f32 %v46_v17, %v32_v16 }
  0x21   :  { %v48_v21 = vadd.f32 %v47_v19, %v33_v18 }
  0x23   :  { %v49_v23 = vadd.f32 %v48_v21, %v34_v20 }
  0x25   :  { %v50_v25 = vadd.f32 %v49_v23, %v35_v22 }
  0x27   :  { %v51_v27 = vadd.f32 %v50_v25, %v36_v24 }
  0x29   :  { %v52_v29 = vadd.f32 %v51_v27, %v37_v26 }
  0x2b   :  { %v53_v30 = vadd.f32 %v52_v29, %v38_v28 }
  0x2d   :  { %v54_v31 = vrot.slane %v53_v30, 4 }
  0x2f   :  { %v55_v32 = vadd.f32 %v54_v31, %v53_v30 }
  0x31   :  { %v56_v33 = vrot.slane %v55_v32, 2 }
  0x33   :  { %v57_v34 = vadd.f32 %v56_v33, %v55_v32 }
  0x35   :  { %v58_v35 = vrot.slane %v57_v34, 1 }
  0x37   :  { %v59_v36 = vadd.f32 %v58_v35, %v57_v34 }
  0x39   :  { %60 = vst [vmem:[#allocation5] sm:$0x1] %v59_v36 }
  0x3a   :  { %111 = shalt.err (!%p108_p9)
}
  0x3b   :  { %70 = dma.vmem_to_hbm [thread:$0]  %s68_s13, 16, %s145_s1, [#allocation4]  }
  0x3c   :  { %122 = dma.done.wait [#allocation4], 16  }
  0x3d   :  { %123 = vsyncadd [#allocation4], 4294967280 }
  0x3e   :  { %74 = vsyncpa [#allocation3], 1 }
  0x3f   :  { %75 = vsyncpa [#allocation4], 1 }

</bundles_post_ra>
